<compile_context>
chip_gen: v5e
topology: v5e:2x2
jax: 0.10.0
libtpu: 0.0.40
codegen_flags: <defaults>
</compile_context>

<pallas_src>
import jax
import jax.numpy as jnp
from jax.experimental import pallas as pl
from jax.experimental.pallas import tpu as pltpu

_LANE = 128
_SUBLANE = 8
_NEG_BIG = -1e30      # pad-class bias: exp(pad - max) underflows to exactly 0


def _round_up(x, m):
    return (x + m - 1) // m * m


def _pick_block_b(b_total):
    # Large batches: 128/256-row tiles (full MXU M) while keeping the grid
    # length >= 2 so both v7x TensorCores get work; small batches: a single
    # sublane-aligned tile covering the whole (padded) batch.
    if b_total >= 512:
        return 256
    if b_total >= 256:
        return 128
    return _round_up(b_total, _SUBLANE)


# ---------------------------------------------------------------------------
# Fused Pallas kernel: both models' visual projection (one MXU push), both
# classifier heads, softmax-confidence comparison and row-wise selection.
# ---------------------------------------------------------------------------
def _cbms_fused_kernel(txtp_ref, vmean_ref, wvis_ref, w1_ref, w2_ref,
                       b1_ref, b2_ref, out_ref):
    Hp = w1_ref.shape[0]     # lane-aligned hidden size (classifier K)

    # Both models' visual projections in one bf16 MXU push (models lane-packed
    # on N, [wv; wp] stacked on a 128-aligned K); f32 accumulation.
    vis_pooled = jnp.dot(vmean_ref[...], wvis_ref[...],
                         preferred_element_type=jnp.float32)      # (TB, 2Hp)
    pooled = txtp_ref[...] + vis_pooled                           # (TB, 2Hp) f32

    # Lane-aligned split into the two models' pooled features.
    f_vqa = pooled[:, :Hp].astype(jnp.bfloat16)
    f_vg = pooled[:, Hp:].astype(jnp.bfloat16)

    # Classifier heads (bf16 inputs, f32 accumulate, f32 bias).
    logits_vqa = jnp.dot(f_vqa, w1_ref[...],
                         preferred_element_type=jnp.float32) + b1_ref[...]
    logits_vg = jnp.dot(f_vg, w2_ref[...],
                        preferred_element_type=jnp.float32) + b2_ref[...]

    # CBMS selection: max(softmax(x)) == 1 / sum(exp(x - max(x))), so
    # conf_vqa > conf_vg  <=>  s_vqa < s_vg (strict; ties pick vg, matching
    # torch's strict '>').  Pad classes carry a -1e30 bias -> exp underflows
    # to exactly 0 and they never affect the denominator.
    def _softmax_denom(logits):
        m = jnp.max(logits, axis=-1, keepdims=True)
        return jnp.sum(jnp.exp(logits - m), axis=-1, keepdims=True)

    s_vqa = _softmax_denom(logits_vqa)
    s_vg = _softmax_denom(logits_vg)
    out_ref[...] = jnp.where(s_vqa < s_vg,
                             logits_vqa, logits_vg).astype(out_ref.dtype)


# ---------------------------------------------------------------------------
# Wrapper: plain-JAX pre-reductions + weight packing / padding + one
# pallas_call tiled over the batch.
# ---------------------------------------------------------------------------
@jax.jit
def cbms_forward(p_vqa, p_vg, input_ids, attention_mask, token_type_ids,
                 visual_feats, visual_pos):
    B = input_ids.shape[0]
    H = p_vqa["word_emb"].shape[1]
    Dv = visual_feats.shape[2]
    P = visual_pos.shape[2]
    C = p_vqa["wcls"].shape[1]

    H_pad = _round_up(H, _LANE)          # classifier K, lane aligned
    K_pad = _round_up(Dv + P, _LANE)     # visual-projection K, lane aligned
    C_pad = _round_up(C, _LANE)          # lane-dense output stores
    block_b = _pick_block_b(B)
    B_pad = _round_up(B, block_b)

    # ---- plain-JAX pre-reductions (fused by XLA with the embedding gather);
    # ---- kernel sees only the pooled (B, 2H_pad) / (B, K_pad) activations.
    mask = attention_mask.astype(jnp.float32)
    denom = jnp.maximum(jnp.sum(mask, axis=1, keepdims=True), 1.0)

    def pool_text(p):
        txt = p["word_emb"][input_ids] + p["type_emb"][token_type_ids]
        tp = jnp.sum(txt * mask[:, :, None], axis=1) * (1.0 / denom)   # (B, H)
        return jnp.pad(tp, ((0, 0), (0, H_pad - H)))

    txt_pooled = jnp.concatenate([pool_text(p_vqa), pool_text(p_vg)],
                                 axis=-1)                        # (B, 2H_pad) f32

    vmean = jnp.concatenate([jnp.mean(visual_feats, axis=1),
                             jnp.mean(visual_pos, axis=1)], axis=-1)  # (B, Dv+P)
    vmean = jnp.pad(vmean, ((0, 0), (0, K_pad - (Dv + P)))).astype(jnp.bfloat16)

    # ---- pack both models' visual projections: [wv; wp] stacked on a
    # ---- 128-aligned K, models lane-packed on N.
    def pack_wvis(p):
        w = jnp.concatenate([p["wv"], p["wp"]], axis=0)          # (Dv+P, H)
        return jnp.pad(w, ((0, K_pad - (Dv + P)), (0, H_pad - H)))

    wvis = jnp.concatenate([pack_wvis(p_vqa), pack_wvis(p_vg)],
                           axis=1).astype(jnp.bfloat16)          # (K_pad, 2H_pad)

    def pad_cls_w(w):
        return jnp.pad(w, ((0, H_pad - H), (0, C_pad - C))).astype(jnp.bfloat16)

    def pad_cls_b(b):
        return jnp.full((1, C_pad), _NEG_BIG, jnp.float32).at[:, :C].set(
            b.astype(jnp.float32))

    w1, w2 = pad_cls_w(p_vqa["wcls"]), pad_cls_w(p_vg["wcls"])
    b1, b2 = pad_cls_b(p_vqa["bcls"]), pad_cls_b(p_vg["bcls"])

    def pad_batch(x):
        return jnp.pad(x, ((0, B_pad - B), (0, 0)))

    txt_p = pad_batch(txt_pooled)
    vmean_p = pad_batch(vmean)

    act = lambda i: (i, 0)          # batch-tiled activations (double-buffered)
    resident = lambda i: (0, 0)     # weights/biases: constant block index

    def resident_spec(shape):
        # Constant index_map -> VMEM-resident across the grid; single buffer
        # (no double buffering needed, halves resident-weight VMEM at real
        # LXMERT sizes).
        return pl.BlockSpec(shape, resident, pipeline_mode=pl.Buffered(1))

    out = pl.pallas_call(
        _cbms_fused_kernel,
        out_shape=jax.ShapeDtypeStruct((B_pad, C_pad), jnp.float32),
        grid=(B_pad // block_b,),
        in_specs=[
            pl.BlockSpec((block_b, 2 * H_pad), act),
            pl.BlockSpec((block_b, K_pad), act),
            resident_spec((K_pad, 2 * H_pad)),
            resident_spec((H_pad, C_pad)),
            resident_spec((H_pad, C_pad)),
            resident_spec((1, C_pad)),
            resident_spec((1, C_pad)),
        ],
        out_specs=pl.BlockSpec((block_b, C_pad), act),
        compiler_params=pltpu.CompilerParams(
            dimension_semantics=("parallel",),
            vmem_limit_bytes=48 * 1024 * 1024),
    )(txt_p, vmean_p, wvis, w1, w2, b1, b2)
    return out[:B, :C]


# ---------------------------------------------------------------------------
# Stand-in LXMERTForVQA params
# ---------------------------------------------------------------------------
def init_lxmert_params(key, vocab, hidden, vis_dim, pos_dim, num_classes):
    ks = jax.random.split(key, 6)
    s = 0.02
    return {
        "word_emb": s * jax.random.normal(ks[0], (vocab, hidden), jnp.float32),
        "type_emb": s * jax.random.normal(ks[1], (2, hidden), jnp.float32),
        "wv": s * jax.random.normal(ks[2], (vis_dim, hidden), jnp.float32),
        "wp": s * jax.random.normal(ks[3], (pos_dim, hidden), jnp.float32),
        "wcls": s * jax.random.normal(ks[4], (hidden, num_classes), jnp.float32),
        "bcls": s * jax.random.normal(ks[5], (1, num_classes), jnp.float32),
    }


# ---------------------------------------------------------------------------
# Pure-JAX reference: same stand-in backbone math (same bf16 matmul-input
# rounding), but the CBMS selection uses the literal torch semantics
# (max(softmax(.)) + strict '>' where) to check the in-kernel 1/s trick.
# ---------------------------------------------------------------------------
def _ref_forward(p_vqa, p_vg, input_ids, attention_mask, token_type_ids,
                 visual_feats, visual_pos):
    m = attention_mask.astype(jnp.float32)
    vmean = jnp.concatenate([jnp.mean(visual_feats, axis=1),
                             jnp.mean(visual_pos, axis=1)], axis=-1)

    def model_logits(p):
        txt = p["word_emb"][input_ids] + p["type_emb"][token_type_ids]
        denom = jnp.maximum(jnp.sum(m, axis=1, keepdims=True), 1.0)
        tp = jnp.sum(txt * m[..., None], axis=1) * (1.0 / denom)
        wvis = jnp.concatenate([p["wv"], p["wp"]], axis=0)
        vp = jnp.dot(vmean.astype(jnp.bfloat16), wvis.astype(jnp.bfloat16),
                     preferred_element_type=jnp.float32)
        f = (tp + vp).astype(jnp.bfloat16)
        return jnp.dot(f, p["wcls"].astype(jnp.bfloat16),
                       preferred_element_type=jnp.float32) + p["bcls"]

    l_vqa, l_vg = model_logits(p_vqa), model_logits(p_vg)
    c_vqa = jnp.max(jax.nn.softmax(l_vqa, axis=1), axis=1)
    c_vg = jnp.max(jax.nn.softmax(l_vg, axis=1), axis=1)
    return jnp.where(c_vqa[:, None] > c_vg[:, None], l_vqa, l_vg)


# ---------------------------------------------------------------------------
if __name__ == "__main__":
    B, L, H = 16, 8, 32          # batch, seq len, hidden
    V, Dv, P = 8, 32, 4          # visual regions, visual feat dim, pos dim
    C = 16                       # num_classes
    VOCAB = 100

    root = jax.random.PRNGKey(0)
    k_vqa, k_vg, k_ids, k_vf, k_vp = jax.random.split(root, 5)

    p_vqa = init_lxmert_params(k_vqa, VOCAB, H, Dv, P, C)
    p_vg = init_lxmert_params(k_vg, VOCAB, H, Dv, P, C)

    input_ids = jax.random.randint(k_ids, (B, L), 0, VOCAB, dtype=jnp.int32)
    attention_mask = jnp.ones((B, L), jnp.float32).at[:, L - 2:].set(0.0)
    token_type_ids = jnp.zeros((B, L), jnp.int32)
    visual_feats = jax.random.normal(k_vf, (B, V, Dv), jnp.float32)
    visual_pos = jax.random.uniform(k_vp, (B, V, P), jnp.float32)

    out = cbms_forward(p_vqa, p_vg, input_ids, attention_mask, token_type_ids,
                       visual_feats, visual_pos)
    out = jax.block_until_ready(out)

    ref = _ref_forward(p_vqa, p_vg, input_ids, attention_mask, token_type_ids,
                       visual_feats, visual_pos)
    assert out.shape == (B, C)
    assert jnp.allclose(out, ref, atol=1e-4, rtol=1e-4), float(
        jnp.max(jnp.abs(out - ref)))

    print("KERNEL_OK")
</pallas_src>

<mosaic_0001>
module attributes {stable_mosaic.version = 11 : i64} {
  func.func @_cbms_fused_kernel(%arg0: i32, %arg1: memref<16x256xf32, #tpu.memory_space<vmem>>, %arg2: memref<16x128xbf16, #tpu.memory_space<vmem>>, %arg3: memref<128x256xbf16, #tpu.memory_space<vmem>>, %arg4: memref<128x128xbf16, #tpu.memory_space<vmem>>, %arg5: memref<128x128xbf16, #tpu.memory_space<vmem>>, %arg6: memref<1x128xf32, #tpu.memory_space<vmem>>, %arg7: memref<1x128xf32, #tpu.memory_space<vmem>>, %arg8: memref<16x128xf32, #tpu.memory_space<vmem>>) attributes {dimension_semantics = [#tpu.dimension_semantics<parallel>], iteration_bounds = array<i64: 1>, scalar_prefetch = 0 : i64, scratch_operands = 0 : i64, tpu.core_type = #tpu.core_type<tc>, window_params = [{transform_indices = @transform_0, window_bounds = array<i64: 16, 256>}, {transform_indices = @transform_1, window_bounds = array<i64: 16, 128>}, {pipeline_mode = #tpu.pipeline_mode<synchronous>, transform_indices = @transform_2, window_bounds = array<i64: 128, 256>}, {pipeline_mode = #tpu.pipeline_mode<synchronous>, transform_indices = @transform_3, window_bounds = array<i64: 128, 128>}, {pipeline_mode = #tpu.pipeline_mode<synchronous>, transform_indices = @transform_4, window_bounds = array<i64: 128, 128>}, {pipeline_mode = #tpu.pipeline_mode<synchronous>, transform_indices = @transform_5, window_bounds = array<i64: 1, 128>}, {pipeline_mode = #tpu.pipeline_mode<synchronous>, transform_indices = @transform_6, window_bounds = array<i64: 1, 128>}, {transform_indices = @transform_7, window_bounds = array<i64: 16, 128>}]} {
    %c0 = arith.constant 0 : index
    %c0_0 = arith.constant 0 : index
    %0 = vector.load %arg2[%c0, %c0_0] : memref<16x128xbf16, #tpu.memory_space<vmem>>, vector<16x128xbf16>
    %c0_1 = arith.constant 0 : index
    %c0_2 = arith.constant 0 : index
    %1 = vector.load %arg3[%c0_1, %c0_2] : memref<128x256xbf16, #tpu.memory_space<vmem>>, vector<128x256xbf16>
    %cst = arith.constant dense<0.000000e+00> : vector<16x256xf32>
    %2 = tpu.matmul %0, %1, %cst {dimension_numbers = #tpu.dot_dimension_numbers<[1], [0], [0], [1], [0, 0, 1, 1], [], []>} : vector<16x128xbf16>, vector<128x256xbf16>, vector<16x256xf32> -> vector<16x256xf32>
    %c0_3 = arith.constant 0 : index
    %c0_4 = arith.constant 0 : index
    %3 = vector.load %arg1[%c0_3, %c0_4] : memref<16x256xf32, #tpu.memory_space<vmem>>, vector<16x256xf32>
    %4 = arith.addf %3, %2 : vector<16x256xf32>
    %5 = vector.extract_strided_slice %4 {offsets = [0, 0], sizes = [16, 128], strides = [1, 1]} : vector<16x256xf32> to vector<16x128xf32>
    %6 = arith.truncf %5 : vector<16x128xf32> to vector<16x128xbf16>
    %7 = vector.extract_strided_slice %4 {offsets = [0, 128], sizes = [16, 128], strides = [1, 1]} : vector<16x256xf32> to vector<16x128xf32>
    %8 = arith.truncf %7 : vector<16x128xf32> to vector<16x128xbf16>
    %c0_5 = arith.constant 0 : index
    %c0_6 = arith.constant 0 : index
    %9 = vector.load %arg4[%c0_5, %c0_6] : memref<128x128xbf16, #tpu.memory_space<vmem>>, vector<128x128xbf16>
    %cst_7 = arith.constant dense<0.000000e+00> : vector<16x128xf32>
    %10 = tpu.matmul %6, %9, %cst_7 {dimension_numbers = #tpu.dot_dimension_numbers<[1], [0], [0], [1], [0, 0, 1, 1], [], []>} : vector<16x128xbf16>, vector<128x128xbf16>, vector<16x128xf32> -> vector<16x128xf32>
    %c0_8 = arith.constant 0 : index
    %c0_9 = arith.constant 0 : index
    %11 = vector.load %arg6[%c0_8, %c0_9] : memref<1x128xf32, #tpu.memory_space<vmem>>, vector<1x128xf32>
    %12 = vector.broadcast %11 : vector<1x128xf32> to vector<16x128xf32>
    %13 = arith.addf %10, %12 : vector<16x128xf32>
    %c0_10 = arith.constant 0 : index
    %c0_11 = arith.constant 0 : index
    %14 = vector.load %arg5[%c0_10, %c0_11] : memref<128x128xbf16, #tpu.memory_space<vmem>>, vector<128x128xbf16>
    %cst_12 = arith.constant dense<0.000000e+00> : vector<16x128xf32>
    %15 = tpu.matmul %8, %14, %cst_12 {dimension_numbers = #tpu.dot_dimension_numbers<[1], [0], [0], [1], [0, 0, 1, 1], [], []>} : vector<16x128xbf16>, vector<128x128xbf16>, vector<16x128xf32> -> vector<16x128xf32>
    %c0_13 = arith.constant 0 : index
    %c0_14 = arith.constant 0 : index
    %16 = vector.load %arg7[%c0_13, %c0_14] : memref<1x128xf32, #tpu.memory_space<vmem>>, vector<1x128xf32>
    %17 = vector.broadcast %16 : vector<1x128xf32> to vector<16x128xf32>
    %18 = arith.addf %15, %17 : vector<16x128xf32>
    %cst_15 = arith.constant dense<0xFF800000> : vector<16xf32>
    %19 = vector.multi_reduction <maximumf>, %13, %cst_15 [1] : vector<16x128xf32> to vector<16xf32>
    %20 = vector.shape_cast %19 : vector<16xf32> to vector<16x1xf32>
    %21 = vector.broadcast %20 : vector<16x1xf32> to vector<16x128xf32>
    %22 = arith.subf %13, %21 : vector<16x128xf32>
    %23 = math.exp %22 : vector<16x128xf32>
    %cst_16 = arith.constant dense<0.000000e+00> : vector<16xf32>
    %24 = vector.multi_reduction <add>, %23, %cst_16 [1] : vector<16x128xf32> to vector<16xf32>
    %25 = vector.shape_cast %24 : vector<16xf32> to vector<16x1xf32>
    %cst_17 = arith.constant dense<0xFF800000> : vector<16xf32>
    %26 = vector.multi_reduction <maximumf>, %18, %cst_17 [1] : vector<16x128xf32> to vector<16xf32>
    %27 = vector.shape_cast %26 : vector<16xf32> to vector<16x1xf32>
    %28 = vector.broadcast %27 : vector<16x1xf32> to vector<16x128xf32>
    %29 = arith.subf %18, %28 : vector<16x128xf32>
    %30 = math.exp %29 : vector<16x128xf32>
    %cst_18 = arith.constant dense<0.000000e+00> : vector<16xf32>
    %31 = vector.multi_reduction <add>, %30, %cst_18 [1] : vector<16x128xf32> to vector<16xf32>
    %32 = vector.shape_cast %31 : vector<16xf32> to vector<16x1xf32>
    %33 = arith.cmpf olt, %25, %32 : vector<16x1xf32>
    %34 = vector.shape_cast %33 : vector<16x1xi1> to vector<16x1xi1>
    %35 = vector.broadcast %34 : vector<16x1xi1> to vector<16x128xi1>
    %36 = arith.select %35, %13, %18 : vector<16x128xi1>, vector<16x128xf32>
    %c0_19 = arith.constant 0 : index
    %c0_20 = arith.constant 0 : index
    %37 = vector.load %arg8[%c0_19, %c0_20] : memref<16x128xf32, #tpu.memory_space<vmem>>, vector<16x128xf32>
    tpu.vector_store %arg8[%c0_19, %c0_20], %36 {strides = array<i32>} : memref<16x128xf32, #tpu.memory_space<vmem>>, vector<16x128xf32>,
    return
  }
  func.func @transform_0(%arg0: i32) -> (i32, i32) {
    %c0_i32 = arith.constant 0 : i32
    %c0_i32_0 = arith.constant 0 : i32
    return %arg0, %c0_i32 : i32, i32
  }
  func.func @transform_1(%arg0: i32) -> (i32, i32) {
    %c0_i32 = arith.constant 0 : i32
    %c0_i32_0 = arith.constant 0 : i32
    return %arg0, %c0_i32 : i32, i32
  }
  func.func @transform_2(%arg0: i32) -> (i32, i32) {
    %c0_i32 = arith.constant 0 : i32
    %c0_i32_0 = arith.constant 0 : i32
    %c0_i32_1 = arith.constant 0 : i32
    return %c0_i32, %c0_i32_0 : i32, i32
  }
  func.func @transform_3(%arg0: i32) -> (i32, i32) {
    %c0_i32 = arith.constant 0 : i32
    %c0_i32_0 = arith.constant 0 : i32
    %c0_i32_1 = arith.constant 0 : i32
    return %c0_i32, %c0_i32_0 : i32, i32
  }
  func.func @transform_4(%arg0: i32) -> (i32, i32) {
    %c0_i32 = arith.constant 0 : i32
    %c0_i32_0 = arith.constant 0 : i32
    %c0_i32_1 = arith.constant 0 : i32
    return %c0_i32, %c0_i32_0 : i32, i32
  }
  func.func @transform_5(%arg0: i32) -> (i32, i32) {
    %c0_i32 = arith.constant 0 : i32
    %c0_i32_0 = arith.constant 0 : i32
    %c0_i32_1 = arith.constant 0 : i32
    return %c0_i32, %c0_i32_0 : i32, i32
  }
  func.func @transform_6(%arg0: i32) -> (i32, i32) {
    %c0_i32 = arith.constant 0 : i32
    %c0_i32_0 = arith.constant 0 : i32
    %c0_i32_1 = arith.constant 0 : i32
    return %c0_i32, %c0_i32_0 : i32, i32
  }
  func.func @transform_7(%arg0: i32) -> (i32, i32) {
    %c0_i32 = arith.constant 0 : i32
    %c0_i32_0 = arith.constant 0 : i32
    return %arg0, %c0_i32 : i32, i32
  }
}

</mosaic_0001>

<bundles_post_ra>
// kernel: cbms_forward.1
= control target key start
LH: loop header
LB: loop body
LE: loop exit
PB: predicated region body
PF: predicated region fallthrough
CT: control target
= control target key end

     0   :  { %s804_s0 = inlined_call_operand.vmem [shape: f32[16,256], index: 0, kind: input, shape index: {}]   ;;  %s805_s1 = inlined_call_operand.vmem [shape: bf16[16,128], index: 1, kind: input, shape index: {}]   ;;  %s806_s2 = inlined_call_operand.vmem [shape: bf16[128,256], index: 2, kind: input, shape index: {}]   ;;  %s807_s3 = inlined_call_operand.vmem [shape: bf16[128,128], index: 3, kind: input, shape index: {}]   ;;  %s808_s4 = inlined_call_operand.vmem [shape: bf16[128,128], index: 4, kind: input, shape index: {}]   ;;  %s809_s5 = inlined_call_operand.vmem [shape: f32[1,128], index: 5, kind: input, shape index: {}]   ;;  %s810_s6 = inlined_call_operand.vmem [shape: f32[1,128], index: 6, kind: input, shape index: {}]   ;;  %s811_s7 = inlined_call_operand.hbm [shape: f32[16,128], index: 7, kind: output, shape index: {}]  }
   0x1   :  { %v451_v0 = vld [vmem:[%s806_s2 + $0x70] sm:$0xf]  ;;  %v537_v1 = vld [vmem:[%s806_s2 + $0x74] sm:$0xf0]  ;;  %v536_v2 = vld [vmem:[%s806_s2 + $0x74] sm:$0xf] }
   0x2   :  { %v452_v3 = vor.u32 %v537_v1, %v451_v0  ;;  %v453_v4 = vld [vmem:[%s806_s2 + $0x78] sm:$0xf0]  ;;  %v443_v5 = vld [vmem:[%s806_s2 + $0x60] sm:$0xf]  ;;  %v535_v6 = vld [vmem:[%s806_s2 + $0x64] sm:$0xf0] }
   0x3   :  { %v456_v7 = vor.u32 %v536_v2, %v453_v4  ;;  %v534_v8 = vld [vmem:[%s806_s2 + $0x64] sm:$0xf]  ;;  %v445_v9 = vld [vmem:[%s806_s2 + $0x68] sm:$0xf0]  ;;  %v444_v10 = vor.u32 %v535_v6, %v443_v5  ;;  %v435_v12 = vld [vmem:[%s806_s2 + $0x50] sm:$0xf] }
   0x4   :  { %131 = vmatpush.bf16.msra.mxu0 %v452_v3  ;;  %v448_v11 = vor.u32 %v534_v8, %v445_v9  ;;  %v533_v13 = vld [vmem:[%s806_s2 + $0x54] sm:$0xf0]  ;;  %v532_v14 = vld [vmem:[%s806_s2 + $0x54] sm:$0xf]  ;;  %v437_v15 = vld [vmem:[%s806_s2 + $0x58] sm:$0xf0] }
   0x5   :  { %145 = vmatpush.bf16.msra.mxu1 %v456_v7  ;;  %v436_v16 = vor.u32 %v533_v13, %v435_v12  ;;  %v440_v17 = vor.u32 %v532_v14, %v437_v15  ;;  %v427_v18 = vld [vmem:[%s806_s2 + $0x40] sm:$0xf]  ;;  %v531_v19 = vld [vmem:[%s806_s2 + $0x44] sm:$0xf0]  ;;  %v530_v20 = vld [vmem:[%s806_s2 + $0x44] sm:$0xf] }
   0x6   :  { %v429_v21 = vld [vmem:[%s806_s2 + $0x48] sm:$0xf0]  ;;  %v428_v22 = vor.u32 %v531_v19, %v427_v18  ;;  %v545_v23 = vld [vmem:[%s807_s3 + $0x38] sm:$0xff]  ;;  %v419_v26 = vld [vmem:[%s806_s2 + $0x30] sm:$0xf] }
   0x7   :  { %v553_v24 = vld [vmem:[%s808_s4 + $0x38] sm:$0xff]  ;;  %v432_v25 = vor.u32 %v530_v20, %v429_v21  ;;  %v528_v28 = vld [vmem:[%s806_s2 + $0x34] sm:$0xf]  ;;  %237 = vmatpush.bf16.msra.mxu2 %v545_v23 }
   0x8   :  { %132 = vmatpush.bf16.msra.mxu0 %v444_v10  ;;  %v529_v27 = vld [vmem:[%s806_s2 + $0x34] sm:$0xf0]  ;;  %v421_v29 = vld [vmem:[%s806_s2 + $0x38] sm:$0xf0]  ;;  %319 = vmatpush.bf16.msra.mxu3 %v553_v24  ;;  %v544_v30 = vld [vmem:[%s807_s3 + $0x30] sm:$0xff] }
   0x9   :  { %146 = vmatpush.bf16.msra.mxu1 %v448_v11  ;;  %v552_v31 = vld [vmem:[%s808_s4 + $0x30] sm:$0xff]  ;;  %v420_v32 = vor.u32 %v529_v27, %v419_v26 }
   0xc   :  { %133 = vmatpush.bf16.msra.mxu0 %v436_v16 }
   0xd   :  { %147 = vmatpush.bf16.msra.mxu1 %v440_v17 }
  0x10   :  { %134 = vmatpush.bf16.msra.mxu0 %v428_v22 }
  0x11   :  { %12 = vsyncpa [#allocation3], 0  ;;  %148 = vmatpush.bf16.msra.mxu1 %v432_v25  ;;  %v424_v33 = vor.u32 %v528_v28, %v421_v29  ;;  %v411_v34 = vld [vmem:[%s806_s2 + $0x20] sm:$0xf]  ;;  %v527_v35 = vld [vmem:[%s806_s2 + $0x24] sm:$0xf0]  ;;  %238 = vmatpush.bf16.msra.mxu2 %v544_v30 }
  0x12   :  { %v526_v36 = vld [vmem:[%s806_s2 + $0x24] sm:$0xf]  ;;  %v413_v37 = vld [vmem:[%s806_s2 + $0x28] sm:$0xf0]  ;;  %320 = vmatpush.bf16.msra.mxu3 %v552_v31  ;;  %v412_v40 = vor.u32 %v527_v35, %v411_v34  ;;  %v403_v42 = vld [vmem:[%s806_s2 + $0x10] sm:$0xf] }
  0x13   :  { %v543_v38 = vld [vmem:[%s807_s3 + $0x28] sm:$0xff]  ;;  %v416_v41 = vor.u32 %v526_v36, %v413_v37  ;;  %v525_v43 = vld [vmem:[%s806_s2 + $0x14] sm:$0xf0]  ;;  %v524_v44 = vld [vmem:[%s806_s2 + $0x14] sm:$0xf]  ;;  %s377_s16 = sshll.u32 %s811_s7, 4  ;;  %s378_s16 = int_to_ptr.hbm [resolvable:$true] %s377_s16 }
  0x14   :  { %v551_v39 = vld [vmem:[%s808_s4 + $0x28] sm:$0xff]  ;;  %135 = vmatpush.bf16.msra.mxu0 %v420_v32  ;;  %v405_v45 = vld [vmem:[%s806_s2 + $0x18] sm:$0xf0]  ;;  %v542_v46 = vld [vmem:[%s807_s3 + $0x20] sm:$0xff]  ;;  %v404_v48 = vor.u32 %v525_v43, %v403_v42  ;;  %s594_s17 = smov 128  }
  0x15   :  { %149 = vmatpush.bf16.msra.mxu1 %v424_v33  ;;  %239 = vmatpush.bf16.msra.mxu2 %v543_v38  ;;  %v550_v47 = vld [vmem:[%s808_s4 + $0x20] sm:$0xff]  ;;  %v408_v49 = vor.u32 %v524_v44, %v405_v45  ;;  %v523_v51 = vld [vmem:[%s806_s2 + $0x4] sm:$0xf0]  ;;  %v397_v53 = vld [vmem:[%s806_s2 + $0x8] sm:$0xf0] }
  0x16   :  { %321 = vmatpush.bf16.msra.mxu3 %v551_v39  ;;  %v395_v50 = vld [vmem:[%s806_s2] sm:$0xf]  ;;  %v522_v52 = vld [vmem:[%s806_s2 + $0x4] sm:$0xf]  ;;  %v541_v54 = vld [vmem:[%s807_s3 + $0x18] sm:$0xff]  ;;  %s595_s2 = smov 8  }
  0x17   :  { %v549_v55 = vld [vmem:[%s808_s4 + $0x18] sm:$0xff]  ;;  %v396_v56 = vor.u32 %v523_v51, %v395_v50  ;;  %v400_v57 = vor.u32 %v522_v52, %v397_v53  ;;  %v521_v58 = vld [vmem:[%s805_s1] sm:$0xff]  ;;  %v540_v59 = vld [vmem:[%s807_s3 + $0x10] sm:$0xff] }
  0x18   :  { %136 = vmatpush.bf16.msra.mxu0 %v412_v40  ;;  %v548_v60 = vld [vmem:[%s808_s4 + $0x10] sm:$0xff]  ;;  %v539_v61 = vld [vmem:[%s807_s3 + $0x8] sm:$0xff]  ;;  %v538_v63 = vld [vmem:[%s807_s3] sm:$0xff] }
  0x19   :  { %150 = vmatpush.bf16.msra.mxu1 %v416_v41  ;;  %240 = vmatpush.bf16.msra.mxu2 %v542_v46  ;;  %v547_v62 = vld [vmem:[%s808_s4 + $0x8] sm:$0xff]  ;;  %v546_v0 = vld [vmem:[%s808_s4] sm:$0xff]  ;;  %v161_v4 = vld [vmem:[%s804_s0 + $0x10] sm:$0xff] }
  0x1a   :  { %322 = vmatpush.bf16.msra.mxu3 %v550_v47  ;;  %v159_v3 = vld [vmem:[%s804_s0] sm:$0xff]  ;;  %v160_v5 = vld [vmem:[%s804_s0 + $0x8] sm:$0xff]  ;;  %v162_v6 = vld [vmem:[%s804_s0 + $0x18] sm:$0xff]  ;;  %s593_s0 = smov [#allocation2]  }
  0x1b   :  { %v557_v15 = vld [vmem:[%s809_s5] ss:$0 sm:$0xff]  ;;  %s375_s5 = sshll.u32 %s593_s0, 4  ;;  %s376_s5 = int_to_ptr.vmem [resolvable:$true] %s375_s5 }
  0x1c   :  { %137 = vmatpush.bf16.msra.mxu0 %v404_v48  ;;  %v558_v16 = vld [vmem:[%s810_s6] ss:$0 sm:$0xff] }
  0x1d   :  { %151 = vmatpush.bf16.msra.mxu1 %v408_v49  ;;  %241 = vmatpush.bf16.msra.mxu2 %v541_v54 }
  0x1e   :  { %323 = vmatpush.bf16.msra.mxu3 %v549_v55 }
  0x20   :  { %138 = vmatpush.bf16.msra.mxu0 %v396_v56 }
  0x21   :  { %152 = vmatpush.bf16.msra.mxu1 %v400_v57  ;;  %242 = vmatpush.bf16.msra.mxu2 %v540_v59 }
  0x22   :  { %324 = vmatpush.bf16.msra.mxu3 %v548_v60 }
  0x23   :  { %139 = vmatmul.bf16.vlgmr.msra.gmra.mxu0 %v521_v58 }
  0x24   :  { %153 = vmatmul.bf16.vlgmr.msra.gmra.mxu1 %v521_v58 }
  0x25   :  { %243 = vmatpush.bf16.msra.mxu2 %v539_v61 }
  0x26   :  { %325 = vmatpush.bf16.msra.mxu3 %v547_v62 }
  0x29   :  { %244 = vmatpush.bf16.msra.mxu2 %v538_v63 }
  0x2a   :  { %326 = vmatpush.bf16.msra.mxu3 %v546_v0 }
  0xa0   :  { %v140_v1 = vpop.f32.mrf.mxu0 }
  0xa1   :  { %v154_v2 = vpop.f32.mrf.mxu1  ;;  %v163_v8 = vadd.f32 %v159_v3, %v140_v1 }
  0xa2   :  { %v164_v11 = vadd.f32 %v160_v5, %v154_v2 }
  0xa8   :  { %v142_v7 = vpop.f32.mrf.mxu0 }
  0xa9   :  { %v165_v9 = vadd.f32 %v161_v4, %v142_v7  ;;  %v156_v10 = vpop.f32.mrf.mxu1 }
  0xaa   :  { %v166_v12 = vadd.f32 %v162_v6, %v156_v10 }
  0xab   :  { %v167_v13 = vpack.c.bf16 %v165_v9, %v163_v8 }
  0xac   :  { %v168_v14 = vpack.c.bf16 %v166_v12, %v164_v11 }
  0xad   :  { %245 = vmatmul.bf16.vlgmr.msra.gmra.mxu2 %v167_v13 }
  0xae   :  { %327 = vmatmul.bf16.vlgmr.msra.gmra.mxu3 %v168_v14 }
 0x130   :  { %v246_v17 = vpop.f32.mrf.mxu2 }
 0x131   :  { %v247_v18 = vadd.f32 %v557_v15, %v246_v17  ;;  %v328_v19 = vpop.f32.mrf.mxu3 }
 0x132   :  { %v329_v20 = vadd.f32 %v558_v16, %v328_v19 }
 0x133   :  { %333 = vmax.xlane.f32.xlu0 %v247_v18 }
 0x134   :  { %347 = vmax.xlane.f32.xlu1 %v329_v20 }
 0x138   :  { %v248_v21 = vpop.f32.mrf.mxu2 }
 0x139   :  { %v249_v22 = vadd.f32 %v557_v15, %v248_v21  ;;  %v330_v23 = vpop.f32.mrf.mxu3 }
 0x13a   :  { %v331_v24 = vadd.f32 %v558_v16, %v330_v23 }
 0x13b   :  { %335 = vmax.xlane.f32.xlu0 %v249_v22 }
 0x13c   :  { %349 = vmax.xlane.f32.xlu1 %v331_v24 }
 0x1a6   :  { %v334_v25 = vpop.xlane.xlu0 %333 }
 0x1a7   :  { %v348_v26 = vpop.xlane.xlu1 %347  ;;  %v337_v27 = vsub.f32 %v247_v18, %v334_v25 }
 0x1a8   :  { %v351_v28 = vsub.f32 %v329_v20, %v348_v26 }
 0x1a9   :  { %v339_v29 = vmul.f32 1.442695, %v337_v27 }
 0x1aa   :  { %v353_v30 = vmul.f32 1.442695, %v351_v28 }
 0x1ab   :  { %559 = vpow2.f32 %v339_v29 }
 0x1ac   :  { %561 = vpow2.f32 %v353_v30 }
 0x1ae   :  { %v336_v31 = vpop.xlane.xlu0 %335 }
 0x1af   :  { %v350_v32 = vpop.xlane.xlu1 %349  ;;  %v338_v33 = vsub.f32 %v249_v22, %v336_v31 }
 0x1b0   :  { %v352_v34 = vsub.f32 %v331_v24, %v350_v32 }
 0x1b1   :  { %v560_v35 = vpop.eup %559  ;;  %v341_v36 = vmul.f32 1.442695, %v338_v33 }
 0x1b2   :  { %v562_v37 = vpop.eup %561  ;;  %v355_v38 = vmul.f32 1.442695, %v352_v34  ;;  %343 = vadd.xlane.f32.xlu2 %v560_v35 }
 0x1b3   :  { %563 = vpow2.f32 %v341_v36  ;;  %357 = vadd.xlane.f32.xlu0 %v562_v37 }
 0x1b4   :  { %565 = vpow2.f32 %v355_v38 }
 0x1b9   :  { %v564_v39 = vpop.eup %563 }
 0x1ba   :  { %v566_v40 = vpop.eup %565  ;;  %345 = vadd.xlane.f32.xlu2 %v564_v39 }
 0x1bb   :  { %359 = vadd.xlane.f32.xlu1 %v566_v40 }
 0x225   :  { %v344_v41 = vpop.xlane.xlu2 %343 }
 0x226   :  { %v358_v42 = vpop.xlane.xlu0 %357 }
 0x227   :  { %vm361_vm0 = vcmp.lt.f32.partialorder %v344_v41, %v358_v42 }
 0x228   :  { %v367_v43 = vsel %vm361_vm0, %v247_v18, %v329_v20 }
 0x229   :  { %369 = vst [vmem:[#allocation2] sm:$0xff] %v367_v43 }
 0x22d   :  { %v346_v44 = vpop.xlane.xlu2 %345 }
 0x22e   :  { %v360_v45 = vpop.xlane.xlu1 %359 }
 0x22f   :  { %vm362_vm1 = vcmp.lt.f32.partialorder %v346_v44, %v360_v45 }
 0x230   :  { %v368_v46 = vsel %vm362_vm1, %v249_v22, %v331_v24 }
 0x231   :  { %370 = vst [vmem:[#allocation2 + $0x8] sm:$0xff] %v368_v46 }
 0x232   :  { %383 = dma.vmem_to_hbm [thread:$0]  %s376_s5, 256, %s378_s16, [#allocation3], %s594_s17, %s594_s17, %s595_s2  }
 0x233   :  { %591 = dma.done.wait [#allocation3], 256  }
 0x234   :  { %592 = vsyncadd [#allocation3], 4294967040 }
 0x235   :  { %388 = vsyncpa [#allocation3], 1 }

</bundles_post_ra>
